<compile_context>
chip_gen: v5e
topology: v5e:2x2
jax: 0.10.0
libtpu: 0.0.40
codegen_flags: <defaults>
</compile_context>

<pallas_src>
import functools
import math

import jax
import jax.numpy as jnp
from jax import lax
from jax.experimental import pallas as pl
from jax.experimental.pallas import tpu as pltpu


def _gelu_tanh(z):
    # TODO(synk): PyTorch nn.GELU() default is the exact erf form; the tanh
    # approximation is used here (and in the reference) for Mosaic-safe lowering.
    c = math.sqrt(2.0 / math.pi)
    return 0.5 * z * (1.0 + jnp.tanh(c * (z + 0.044715 * (z * z * z))))


def _layer_norm(y, gamma, beta, eps=1e-5):
    mu = jnp.mean(y, axis=-1, keepdims=True)
    d = y - mu
    var = jnp.mean(d * d, axis=-1, keepdims=True)
    return d * lax.rsqrt(var + eps) * gamma + beta


def _gpt_block_kernel(x_ref, wqkv_ref, wproj_ref, bproj_ref, g1_ref, be1_ref,
                      w1_ref, b1_ref, w2_ref, b2_ref, g2_ref, be2_ref, o_ref,
                      *, num_heads, head_size, use_bf16):
    Bb, C, N = x_ref.shape
    H = head_size

    def mm(a, w):  # 2-D MXU matmul; optional bf16 inputs, f32 accumulation
        if use_bf16:
            a = a.astype(jnp.bfloat16)
            w = w.astype(jnp.bfloat16)
        return jnp.dot(a, w, preferred_element_type=jnp.float32)

    def bmm(a, b, dims):  # batched dot_general, same casting policy
        if use_bf16:
            a = a.astype(jnp.bfloat16)
            b = b.astype(jnp.bfloat16)
        return lax.dot_general(a, b, dims, preferred_element_type=jnp.float32)

    x = x_ref[...]                                   # (Bb, C, N) f32
    x2d = x.reshape(Bb * C, N)                       # position-wise view

    # ---- fused QKV projection: one wide matmul ---------------------------
    qkv = mm(x2d, wqkv_ref[...])                     # (Bb*C, nh*H + 2H)
    qkv = qkv.reshape(Bb, C, num_heads * H + 2 * H)
    # pre-scale queries by 1/head_size (cheaper than scaling the (C,C) scores)
    q_all = qkv[..., : num_heads * H] * (1.0 / float(H))
    k = qkv[..., num_heads * H: num_heads * H + H]   # shared key   (Bb, C, H)
    v = qkv[..., num_heads * H + H:]                 # shared value (Bb, C, H)

    # ---- causal mask generated in-kernel (no (C,C) DMA) -------------------
    row = lax.broadcasted_iota(jnp.int32, (C, C), 0)
    col = lax.broadcasted_iota(jnp.int32, (C, C), 1)
    keep = (row >= col)[None, :, :]                  # (1, C, C)

    head_outs = []
    for h in range(num_heads):                       # static unroll; K/V shared (multi-query)
        qh = q_all[..., h * H:(h + 1) * H]           # (Bb, C, H)
        # q @ k^T expressed as a contraction (no materialized transpose)
        s = bmm(qh, k, (((2,), (2,)), ((0,), (0,))))         # (Bb, C, C)
        s = jnp.where(keep, s, jnp.float32(-1e30))           # finite mask value
        m = jnp.max(s, axis=-1, keepdims=True)
        e = jnp.exp(s - m)
        denom = jnp.sum(e, axis=-1, keepdims=True)
        p = e * pl.reciprocal(denom, approx=True)            # EUP vrcp (free slot)
        # TODO(synk): attn_drop is identity (eval / p=0); training dropout would
        # use pltpu.prng_seed + pltpu.prng_random_bits.
        head_outs.append(bmm(p, v, (((2,), (1,)), ((0,), (0,)))))  # (Bb, C, H)

    attn = jnp.concatenate(head_outs, axis=-1)       # (Bb, C, nh*H)
    attn2d = attn.reshape(Bb * C, num_heads * H)

    proj = mm(attn2d, wproj_ref[...]) + bproj_ref[...]       # (Bb*C, N)
    # TODO(synk): multihead-output dropout is identity (eval mode).

    x1 = x2d + _layer_norm(proj, g1_ref[...], be1_ref[...])  # residual 1

    hdn = _gelu_tanh(mm(x1, w1_ref[...]) + b1_ref[...])      # (Bb*C, 4N) lane-dense
    ffn = mm(hdn, w2_ref[...]) + b2_ref[...]                 # (Bb*C, N)
    # TODO(synk): ffn dropout is identity (eval mode).

    out = x1 + _layer_norm(ffn, g2_ref[...], be2_ref[...])   # residual 2
    o_ref[...] = out.reshape(Bb, C, N).astype(o_ref.dtype)


def gpt_block(x, params, *, num_heads, head_size, batch_shards=1,
              use_bf16_matmul=False):
    """Fused GPTBlock forward. x: (B, C, N); params: pre-transposed weights.

    batch_shards=1 folds the whole batch into one block (best on v5e/v6e);
    batch_shards=2 shards the batch across v7x's two TensorCores.
    """
    B, C, N = x.shape
    H = head_size
    assert B % batch_shards == 0
    Bb = B // batch_shards
    d_qkv = num_heads * H + 2 * H
    d_heads = num_heads * H
    d_ffn = 4 * N

    kernel = functools.partial(_gpt_block_kernel, num_heads=num_heads,
                               head_size=head_size, use_bf16=use_bf16_matmul)

    def rep(b):   # weights stay resident across the (tiny) batch grid axis
        return (0, 0)

    flops = (2 * B * C * N * d_qkv                      # fused QKV
             + num_heads * 2 * 2 * B * C * C * H        # scores + p@v
             + 2 * B * C * d_heads * N                  # output proj
             + 2 * B * C * N * d_ffn * 2)               # FFN matmuls
    transcendentals = B * num_heads * C * C + B * C * d_ffn + 2 * B * C
    bytes_accessed = 4 * (2 * x.size
                          + N * d_qkv + d_heads * N + N * d_ffn + d_ffn * N
                          + 6 * N + d_ffn)

    return pl.pallas_call(
        kernel,
        out_shape=jax.ShapeDtypeStruct((B, C, N), jnp.float32),
        grid_spec=pltpu.PrefetchScalarGridSpec(
            num_scalar_prefetch=0,
            grid=(batch_shards,),
            in_specs=[
                pl.BlockSpec((Bb, C, N), lambda b: (b, 0, 0)),  # x
                pl.BlockSpec((N, d_qkv), rep),                  # [Wq heads | Wk | Wv]
                pl.BlockSpec((d_heads, N), rep),                # Wproj^T
                pl.BlockSpec((1, N), rep),                      # bproj
                pl.BlockSpec((1, N), rep),                      # LN1 gamma
                pl.BlockSpec((1, N), rep),                      # LN1 beta
                pl.BlockSpec((N, d_ffn), rep),                  # W1^T
                pl.BlockSpec((1, d_ffn), rep),                  # b1
                pl.BlockSpec((d_ffn, N), rep),                  # W2^T
                pl.BlockSpec((1, N), rep),                      # b2
                pl.BlockSpec((1, N), rep),                      # LN2 gamma
                pl.BlockSpec((1, N), rep),                      # LN2 beta
            ],
            out_specs=pl.BlockSpec((Bb, C, N), lambda b: (b, 0, 0)),
        ),
        compiler_params=pltpu.CompilerParams(
            dimension_semantics=("parallel",),
        ),
        cost_estimate=pl.CostEstimate(flops=flops,
                                      transcendentals=transcendentals,
                                      bytes_accessed=bytes_accessed),
    )(x, params["w_qkv"], params["w_proj"], params["b_proj"],
      params["ln1_g"], params["ln1_b"],
      params["w_ffn1"], params["b_ffn1"], params["w_ffn2"], params["b_ffn2"],
      params["ln2_g"], params["ln2_b"])


def gpt_block_reference(x, wq_heads, wk, wv, wproj, bproj, ln1_g, ln1_b,
                        w1, b1, w2, b2, ln2_g, ln2_b, head_size):
    """Pure-JAX mirror of the PyTorch GPTBlock (unfused, per-head loop)."""
    B, C, N = x.shape
    tril = jnp.tril(jnp.ones((C, C), dtype=jnp.float32))
    k = x @ wk
    v = x @ wv
    heads = []
    for wq in wq_heads:
        q = x @ wq
        s = jnp.einsum("bqh,bkh->bqk", q, k) / float(head_size)
        s = jnp.where(tril[None] == 0.0, -jnp.inf, s)
        p = jax.nn.softmax(s, axis=-1)
        heads.append(jnp.einsum("bqk,bkh->bqh", p, v))
    attn = jnp.concatenate(heads, axis=-1) @ wproj + bproj

    def ln(y, g, b, eps=1e-5):
        mu = y.mean(-1, keepdims=True)
        var = ((y - mu) ** 2).mean(-1, keepdims=True)
        return (y - mu) / jnp.sqrt(var + eps) * g + b

    x1 = x + ln(attn, ln1_g, ln1_b)
    hdn = _gelu_tanh(x1 @ w1 + b1)
    return x1 + ln(hdn @ w2 + b2, ln2_g, ln2_b)


if __name__ == "__main__":
    # config: n_embed=32, head_size=16, num_heads=2, context_len=8, dropouts=0 (eval)
    B, C, N, H, NHEADS = 2, 8, 32, 16, 2

    key = jax.random.PRNGKey(0)
    keys = jax.random.split(key, 14)

    def init(k, shape, fan_in):
        return jax.random.normal(k, shape, dtype=jnp.float32) / math.sqrt(fan_in)

    x = jax.random.normal(keys[0], (B, C, N), dtype=jnp.float32)

    # nn.Linear stores (out, in) and computes x @ W^T; we keep W^T = (in, out).
    wq_heads = [init(keys[1 + h], (N, H), N) for h in range(NHEADS)]
    wk = init(keys[3], (N, H), N)
    wv = init(keys[4], (N, H), N)
    wproj = init(keys[5], (NHEADS * H, N), NHEADS * H)
    bproj = 0.1 * jax.random.normal(keys[6], (1, N), dtype=jnp.float32)
    w1 = init(keys[7], (N, 4 * N), N)
    b1 = 0.1 * jax.random.normal(keys[8], (1, 4 * N), dtype=jnp.float32)
    w2 = init(keys[9], (4 * N, N), 4 * N)
    b2 = 0.1 * jax.random.normal(keys[10], (1, N), dtype=jnp.float32)
    ln1_g = 1.0 + 0.1 * jax.random.normal(keys[11], (1, N), dtype=jnp.float32)
    ln1_b = 0.1 * jax.random.normal(keys[12], (1, N), dtype=jnp.float32)
    ln2_g = 1.0 + 0.1 * jax.random.normal(keys[13], (1, N), dtype=jnp.float32)
    ln2_b = jnp.zeros((1, N), dtype=jnp.float32)

    params = dict(
        w_qkv=jnp.concatenate(wq_heads + [wk, wv], axis=1),  # (N, NHEADS*H + 2H)
        w_proj=wproj, b_proj=bproj,
        ln1_g=ln1_g, ln1_b=ln1_b,
        w_ffn1=w1, b_ffn1=b1, w_ffn2=w2, b_ffn2=b2,
        ln2_g=ln2_g, ln2_b=ln2_b,
    )

    ref = gpt_block_reference(x, wq_heads, wk, wv, wproj, bproj,
                              ln1_g, ln1_b, w1, b1, w2, b2, ln2_g, ln2_b, H)

    # f32 MXU path; whole batch folded into one block (best on v5e/v6e;
    # on v7x pass batch_shards=2 to use both TensorCores).
    out = gpt_block(x, params, num_heads=NHEADS, head_size=H,
                    batch_shards=1, use_bf16_matmul=False)
    out = jax.block_until_ready(out)
    assert out.shape == (B, C, N)
    # tolerance loosened slightly for the approximate EUP reciprocal in softmax
    assert jnp.allclose(out, ref, atol=1e-2, rtol=1e-2)

    # bf16 MXU inputs / f32 accumulation (v6e/v7x recommendation)
    out_bf16 = gpt_block(x, params, num_heads=NHEADS, head_size=H,
                         batch_shards=1, use_bf16_matmul=True)
    out_bf16 = jax.block_until_ready(out_bf16)
    assert jnp.allclose(out_bf16, ref, atol=5e-2, rtol=5e-2)

    print("KERNEL_OK")
</pallas_src>

<mosaic_0001>
module attributes {stable_mosaic.version = 11 : i64} {
  func.func @_gpt_block_kernel(%arg0: i32, %arg1: memref<2x8x32xf32, #tpu.memory_space<vmem>>, %arg2: memref<32x64xf32, #tpu.memory_space<vmem>>, %arg3: memref<32x32xf32, #tpu.memory_space<vmem>>, %arg4: memref<1x32xf32, #tpu.memory_space<vmem>>, %arg5: memref<1x32xf32, #tpu.memory_space<vmem>>, %arg6: memref<1x32xf32, #tpu.memory_space<vmem>>, %arg7: memref<32x128xf32, #tpu.memory_space<vmem>>, %arg8: memref<1x128xf32, #tpu.memory_space<vmem>>, %arg9: memref<128x32xf32, #tpu.memory_space<vmem>>, %arg10: memref<1x32xf32, #tpu.memory_space<vmem>>, %arg11: memref<1x32xf32, #tpu.memory_space<vmem>>, %arg12: memref<1x32xf32, #tpu.memory_space<vmem>>, %arg13: memref<2x8x32xf32, #tpu.memory_space<vmem>>) attributes {dimension_semantics = [#tpu.dimension_semantics<parallel>], iteration_bounds = array<i64: 1>, scalar_prefetch = 0 : i64, scratch_operands = 0 : i64, tpu.core_type = #tpu.core_type<tc>, window_params = [{transform_indices = @transform_0, window_bounds = array<i64: 2, 8, 32>}, {pipeline_mode = #tpu.pipeline_mode<synchronous>, transform_indices = @transform_1, window_bounds = array<i64: 32, 64>}, {pipeline_mode = #tpu.pipeline_mode<synchronous>, transform_indices = @transform_2, window_bounds = array<i64: 32, 32>}, {pipeline_mode = #tpu.pipeline_mode<synchronous>, transform_indices = @transform_3, window_bounds = array<i64: 1, 32>}, {pipeline_mode = #tpu.pipeline_mode<synchronous>, transform_indices = @transform_4, window_bounds = array<i64: 1, 32>}, {pipeline_mode = #tpu.pipeline_mode<synchronous>, transform_indices = @transform_5, window_bounds = array<i64: 1, 32>}, {pipeline_mode = #tpu.pipeline_mode<synchronous>, transform_indices = @transform_6, window_bounds = array<i64: 32, 128>}, {pipeline_mode = #tpu.pipeline_mode<synchronous>, transform_indices = @transform_7, window_bounds = array<i64: 1, 128>}, {pipeline_mode = #tpu.pipeline_mode<synchronous>, transform_indices = @transform_8, window_bounds = array<i64: 128, 32>}, {pipeline_mode = #tpu.pipeline_mode<synchronous>, transform_indices = @transform_9, window_bounds = array<i64: 1, 32>}, {pipeline_mode = #tpu.pipeline_mode<synchronous>, transform_indices = @transform_10, window_bounds = array<i64: 1, 32>}, {pipeline_mode = #tpu.pipeline_mode<synchronous>, transform_indices = @transform_11, window_bounds = array<i64: 1, 32>}, {transform_indices = @transform_12, window_bounds = array<i64: 2, 8, 32>}]} {
    %c0 = arith.constant 0 : index
    %c0_0 = arith.constant 0 : index
    %c0_1 = arith.constant 0 : index
    %0 = vector.load %arg1[%c0, %c0_0, %c0_1] : memref<2x8x32xf32, #tpu.memory_space<vmem>>, vector<2x8x32xf32>
    %1 = vector.shape_cast %0 : vector<2x8x32xf32> to vector<16x32xf32>
    %c0_2 = arith.constant 0 : index
    %c0_3 = arith.constant 0 : index
    %2 = vector.load %arg2[%c0_2, %c0_3] : memref<32x64xf32, #tpu.memory_space<vmem>>, vector<32x64xf32>
    %cst = arith.constant dense<0.000000e+00> : vector<16x64xf32>
    %3 = tpu.matmul %1, %2, %cst {dimension_numbers = #tpu.dot_dimension_numbers<[1], [0], [0], [1], [0, 0, 1, 1], [], []>} : vector<16x32xf32>, vector<32x64xf32>, vector<16x64xf32> -> vector<16x64xf32>
    %4 = vector.shape_cast %3 : vector<16x64xf32> to vector<2x8x64xf32>
    %5 = vector.extract_strided_slice %4 {offsets = [0, 0, 0], sizes = [2, 8, 32], strides = [1, 1, 1]} : vector<2x8x64xf32> to vector<2x8x32xf32>
    %cst_4 = arith.constant 6.250000e-02 : f32
    %6 = vector.broadcast %cst_4 : f32 to vector<2x8x32xf32>
    %7 = arith.mulf %5, %6 : vector<2x8x32xf32>
    %8 = vector.extract_strided_slice %4 {offsets = [0, 0, 32], sizes = [2, 8, 16], strides = [1, 1, 1]} : vector<2x8x64xf32> to vector<2x8x16xf32>
    %9 = vector.extract_strided_slice %4 {offsets = [0, 0, 48], sizes = [2, 8, 16], strides = [1, 1, 1]} : vector<2x8x64xf32> to vector<2x8x16xf32>
    %10 = tpu.iota {dimensions = array<i32: 0>} : vector<8x8xi32>
    %11 = tpu.iota {dimensions = array<i32: 1>} : vector<8x8xi32>
    %12 = arith.cmpi sge, %10, %11 : vector<8x8xi32>
    %13 = vector.shape_cast %12 : vector<8x8xi1> to vector<1x8x8xi1>
    %14 = vector.extract_strided_slice %7 {offsets = [0, 0, 0], sizes = [2, 8, 16], strides = [1, 1, 1]} : vector<2x8x32xf32> to vector<2x8x16xf32>
    %cst_5 = arith.constant dense<0.000000e+00> : vector<2x8x8xf32>
    %15 = tpu.matmul %14, %8, %cst_5 {dimension_numbers = #tpu.dot_dimension_numbers<[2], [2], [1], [1], [0, 0, 0, 1, 1, 1], [0], [0]>} : vector<2x8x16xf32>, vector<2x8x16xf32>, vector<2x8x8xf32> -> vector<2x8x8xf32>
    %cst_6 = arith.constant -1.000000e+30 : f32
    %16 = vector.shape_cast %13 : vector<1x8x8xi1> to vector<1x8x8xi1>
    %17 = vector.broadcast %16 : vector<1x8x8xi1> to vector<2x8x8xi1>
    %18 = vector.broadcast %cst_6 : f32 to vector<2x8x8xf32>
    %19 = arith.select %17, %15, %18 : vector<2x8x8xi1>, vector<2x8x8xf32>
    %cst_7 = arith.constant dense<0xFF800000> : vector<2x8xf32>
    %20 = vector.multi_reduction <maximumf>, %19, %cst_7 [2] : vector<2x8x8xf32> to vector<2x8xf32>
    %21 = vector.shape_cast %20 : vector<2x8xf32> to vector<2x8x1xf32>
    %22 = vector.broadcast %21 : vector<2x8x1xf32> to vector<2x8x8xf32>
    %23 = arith.subf %19, %22 : vector<2x8x8xf32>
    %24 = math.exp %23 : vector<2x8x8xf32>
    %cst_8 = arith.constant dense<0.000000e+00> : vector<2x8xf32>
    %25 = vector.multi_reduction <add>, %24, %cst_8 [2] : vector<2x8x8xf32> to vector<2x8xf32>
    %26 = vector.shape_cast %25 : vector<2x8xf32> to vector<2x8x1xf32>
    %27 = tpu.reciprocal %26 {approx = true} : vector<2x8x1xf32> -> vector<2x8x1xf32>
    %28 = vector.broadcast %27 : vector<2x8x1xf32> to vector<2x8x8xf32>
    %29 = arith.mulf %24, %28 : vector<2x8x8xf32>
    %cst_9 = arith.constant dense<0.000000e+00> : vector<2x8x16xf32>
    %30 = tpu.matmul %29, %9, %cst_9 {dimension_numbers = #tpu.dot_dimension_numbers<[2], [1], [1], [2], [0, 0, 0, 1, 1, 2], [0], [0]>} : vector<2x8x8xf32>, vector<2x8x16xf32>, vector<2x8x16xf32> -> vector<2x8x16xf32>
    %31 = vector.extract_strided_slice %7 {offsets = [0, 0, 16], sizes = [2, 8, 16], strides = [1, 1, 1]} : vector<2x8x32xf32> to vector<2x8x16xf32>
    %cst_10 = arith.constant dense<0.000000e+00> : vector<2x8x8xf32>
    %32 = tpu.matmul %31, %8, %cst_10 {dimension_numbers = #tpu.dot_dimension_numbers<[2], [2], [1], [1], [0, 0, 0, 1, 1, 1], [0], [0]>} : vector<2x8x16xf32>, vector<2x8x16xf32>, vector<2x8x8xf32> -> vector<2x8x8xf32>
    %cst_11 = arith.constant -1.000000e+30 : f32
    %33 = vector.shape_cast %13 : vector<1x8x8xi1> to vector<1x8x8xi1>
    %34 = vector.broadcast %33 : vector<1x8x8xi1> to vector<2x8x8xi1>
    %35 = vector.broadcast %cst_11 : f32 to vector<2x8x8xf32>
    %36 = arith.select %34, %32, %35 : vector<2x8x8xi1>, vector<2x8x8xf32>
    %cst_12 = arith.constant dense<0xFF800000> : vector<2x8xf32>
    %37 = vector.multi_reduction <maximumf>, %36, %cst_12 [2] : vector<2x8x8xf32> to vector<2x8xf32>
    %38 = vector.shape_cast %37 : vector<2x8xf32> to vector<2x8x1xf32>
    %39 = vector.broadcast %38 : vector<2x8x1xf32> to vector<2x8x8xf32>
    %40 = arith.subf %36, %39 : vector<2x8x8xf32>
    %41 = math.exp %40 : vector<2x8x8xf32>
    %cst_13 = arith.constant dense<0.000000e+00> : vector<2x8xf32>
    %42 = vector.multi_reduction <add>, %41, %cst_13 [2] : vector<2x8x8xf32> to vector<2x8xf32>
    %43 = vector.shape_cast %42 : vector<2x8xf32> to vector<2x8x1xf32>
    %44 = tpu.reciprocal %43 {approx = true} : vector<2x8x1xf32> -> vector<2x8x1xf32>
    %45 = vector.broadcast %44 : vector<2x8x1xf32> to vector<2x8x8xf32>
    %46 = arith.mulf %41, %45 : vector<2x8x8xf32>
    %cst_14 = arith.constant dense<0.000000e+00> : vector<2x8x16xf32>
    %47 = tpu.matmul %46, %9, %cst_14 {dimension_numbers = #tpu.dot_dimension_numbers<[2], [1], [1], [2], [0, 0, 0, 1, 1, 2], [0], [0]>} : vector<2x8x8xf32>, vector<2x8x16xf32>, vector<2x8x16xf32> -> vector<2x8x16xf32>
    %48 = tpu.concatenate %30, %47 in 2 : vector<2x8x16xf32>, vector<2x8x16xf32> -> vector<2x8x32xf32>
    %49 = vector.shape_cast %48 : vector<2x8x32xf32> to vector<16x32xf32>
    %c0_15 = arith.constant 0 : index
    %c0_16 = arith.constant 0 : index
    %50 = vector.load %arg3[%c0_15, %c0_16] : memref<32x32xf32, #tpu.memory_space<vmem>>, vector<32x32xf32>
    %cst_17 = arith.constant dense<0.000000e+00> : vector<16x32xf32>
    %51 = tpu.matmul %49, %50, %cst_17 {dimension_numbers = #tpu.dot_dimension_numbers<[1], [0], [0], [1], [0, 0, 1, 1], [], []>} : vector<16x32xf32>, vector<32x32xf32>, vector<16x32xf32> -> vector<16x32xf32>
    %c0_18 = arith.constant 0 : index
    %c0_19 = arith.constant 0 : index
    %52 = vector.load %arg4[%c0_18, %c0_19] : memref<1x32xf32, #tpu.memory_space<vmem>>, vector<1x32xf32>
    %53 = vector.broadcast %52 : vector<1x32xf32> to vector<16x32xf32>
    %54 = arith.addf %51, %53 : vector<16x32xf32>
    %c0_20 = arith.constant 0 : index
    %c0_21 = arith.constant 0 : index
    %55 = vector.load %arg5[%c0_20, %c0_21] : memref<1x32xf32, #tpu.memory_space<vmem>>, vector<1x32xf32>
    %c0_22 = arith.constant 0 : index
    %c0_23 = arith.constant 0 : index
    %56 = vector.load %arg6[%c0_22, %c0_23] : memref<1x32xf32, #tpu.memory_space<vmem>>, vector<1x32xf32>
    %cst_24 = arith.constant dense<0.000000e+00> : vector<16xf32>
    %57 = vector.multi_reduction <add>, %54, %cst_24 [1] : vector<16x32xf32> to vector<16xf32>
    %58 = vector.shape_cast %57 : vector<16xf32> to vector<16x1xf32>
    %cst_25 = arith.constant 3.200000e+01 : f32
    %59 = vector.broadcast %cst_25 : f32 to vector<16x1xf32>
    %60 = arith.divf %58, %59 : vector<16x1xf32>
    %61 = vector.broadcast %60 : vector<16x1xf32> to vector<16x32xf32>
    %62 = arith.subf %54, %61 : vector<16x32xf32>
    %63 = arith.mulf %62, %62 : vector<16x32xf32>
    %cst_26 = arith.constant dense<0.000000e+00> : vector<16xf32>
    %64 = vector.multi_reduction <add>, %63, %cst_26 [1] : vector<16x32xf32> to vector<16xf32>
    %65 = vector.shape_cast %64 : vector<16xf32> to vector<16x1xf32>
    %cst_27 = arith.constant 3.200000e+01 : f32
    %66 = vector.broadcast %cst_27 : f32 to vector<16x1xf32>
    %67 = arith.divf %65, %66 : vector<16x1xf32>
    %cst_28 = arith.constant 9.99999974E-6 : f32
    %68 = vector.broadcast %cst_28 : f32 to vector<16x1xf32>
    %69 = arith.addf %67, %68 : vector<16x1xf32>
    %70 = math.rsqrt %69 : vector<16x1xf32>
    %71 = vector.broadcast %70 : vector<16x1xf32> to vector<16x32xf32>
    %72 = arith.mulf %62, %71 : vector<16x32xf32>
    %73 = vector.broadcast %55 : vector<1x32xf32> to vector<16x32xf32>
    %74 = arith.mulf %72, %73 : vector<16x32xf32>
    %75 = vector.broadcast %56 : vector<1x32xf32> to vector<16x32xf32>
    %76 = arith.addf %74, %75 : vector<16x32xf32>
    %77 = arith.addf %1, %76 : vector<16x32xf32>
    %c0_29 = arith.constant 0 : index
    %c0_30 = arith.constant 0 : index
    %78 = vector.load %arg7[%c0_29, %c0_30] : memref<32x128xf32, #tpu.memory_space<vmem>>, vector<32x128xf32>
    %cst_31 = arith.constant dense<0.000000e+00> : vector<16x128xf32>
    %79 = tpu.matmul %77, %78, %cst_31 {dimension_numbers = #tpu.dot_dimension_numbers<[1], [0], [0], [1], [0, 0, 1, 1], [], []>} : vector<16x32xf32>, vector<32x128xf32>, vector<16x128xf32> -> vector<16x128xf32>
    %c0_32 = arith.constant 0 : index
    %c0_33 = arith.constant 0 : index
    %80 = vector.load %arg8[%c0_32, %c0_33] : memref<1x128xf32, #tpu.memory_space<vmem>>, vector<1x128xf32>
    %81 = vector.broadcast %80 : vector<1x128xf32> to vector<16x128xf32>
    %82 = arith.addf %79, %81 : vector<16x128xf32>
    %cst_34 = arith.constant 5.000000e-01 : f32
    %83 = vector.broadcast %cst_34 : f32 to vector<16x128xf32>
    %84 = arith.mulf %83, %82 : vector<16x128xf32>
    %85 = arith.mulf %82, %82 : vector<16x128xf32>
    %86 = arith.mulf %85, %82 : vector<16x128xf32>
    %cst_35 = arith.constant 4.471500e-02 : f32
    %87 = vector.broadcast %cst_35 : f32 to vector<16x128xf32>
    %88 = arith.mulf %87, %86 : vector<16x128xf32>
    %89 = arith.addf %82, %88 : vector<16x128xf32>
    %cst_36 = arith.constant 0.797884583 : f32
    %90 = vector.broadcast %cst_36 : f32 to vector<16x128xf32>
    %91 = arith.mulf %90, %89 : vector<16x128xf32>
    %92 = math.tanh %91 : vector<16x128xf32>
    %cst_37 = arith.constant 1.000000e+00 : f32
    %93 = vector.broadcast %cst_37 : f32 to vector<16x128xf32>
    %94 = arith.addf %93, %92 : vector<16x128xf32>
    %95 = arith.mulf %84, %94 : vector<16x128xf32>
    %c0_38 = arith.constant 0 : index
    %c0_39 = arith.constant 0 : index
    %96 = vector.load %arg9[%c0_38, %c0_39] : memref<128x32xf32, #tpu.memory_space<vmem>>, vector<128x32xf32>
    %cst_40 = arith.constant dense<0.000000e+00> : vector<16x32xf32>
    %97 = tpu.matmul %95, %96, %cst_40 {dimension_numbers = #tpu.dot_dimension_numbers<[1], [0], [0], [1], [0, 0, 1, 1], [], []>} : vector<16x128xf32>, vector<128x32xf32>, vector<16x32xf32> -> vector<16x32xf32>
    %c0_41 = arith.constant 0 : index
    %c0_42 = arith.constant 0 : index
    %98 = vector.load %arg10[%c0_41, %c0_42] : memref<1x32xf32, #tpu.memory_space<vmem>>, vector<1x32xf32>
    %99 = vector.broadcast %98 : vector<1x32xf32> to vector<16x32xf32>
    %100 = arith.addf %97, %99 : vector<16x32xf32>
    %c0_43 = arith.constant 0 : index
    %c0_44 = arith.constant 0 : index
    %101 = vector.load %arg11[%c0_43, %c0_44] : memref<1x32xf32, #tpu.memory_space<vmem>>, vector<1x32xf32>
    %c0_45 = arith.constant 0 : index
    %c0_46 = arith.constant 0 : index
    %102 = vector.load %arg12[%c0_45, %c0_46] : memref<1x32xf32, #tpu.memory_space<vmem>>, vector<1x32xf32>
    %cst_47 = arith.constant dense<0.000000e+00> : vector<16xf32>
    %103 = vector.multi_reduction <add>, %100, %cst_47 [1] : vector<16x32xf32> to vector<16xf32>
    %104 = vector.shape_cast %103 : vector<16xf32> to vector<16x1xf32>
    %cst_48 = arith.constant 3.200000e+01 : f32
    %105 = vector.broadcast %cst_48 : f32 to vector<16x1xf32>
    %106 = arith.divf %104, %105 : vector<16x1xf32>
    %107 = vector.broadcast %106 : vector<16x1xf32> to vector<16x32xf32>
    %108 = arith.subf %100, %107 : vector<16x32xf32>
    %109 = arith.mulf %108, %108 : vector<16x32xf32>
    %cst_49 = arith.constant dense<0.000000e+00> : vector<16xf32>
    %110 = vector.multi_reduction <add>, %109, %cst_49 [1] : vector<16x32xf32> to vector<16xf32>
    %111 = vector.shape_cast %110 : vector<16xf32> to vector<16x1xf32>
    %cst_50 = arith.constant 3.200000e+01 : f32
    %112 = vector.broadcast %cst_50 : f32 to vector<16x1xf32>
    %113 = arith.divf %111, %112 : vector<16x1xf32>
    %cst_51 = arith.constant 9.99999974E-6 : f32
    %114 = vector.broadcast %cst_51 : f32 to vector<16x1xf32>
    %115 = arith.addf %113, %114 : vector<16x1xf32>
    %116 = math.rsqrt %115 : vector<16x1xf32>
    %117 = vector.broadcast %116 : vector<16x1xf32> to vector<16x32xf32>
    %118 = arith.mulf %108, %117 : vector<16x32xf32>
    %119 = vector.broadcast %101 : vector<1x32xf32> to vector<16x32xf32>
    %120 = arith.mulf %118, %119 : vector<16x32xf32>
    %121 = vector.broadcast %102 : vector<1x32xf32> to vector<16x32xf32>
    %122 = arith.addf %120, %121 : vector<16x32xf32>
    %123 = arith.addf %77, %122 : vector<16x32xf32>
    %124 = vector.shape_cast %123 : vector<16x32xf32> to vector<2x8x32xf32>
    %c0_52 = arith.constant 0 : index
    %c0_53 = arith.constant 0 : index
    %c0_54 = arith.constant 0 : index
    %125 = vector.load %arg13[%c0_52, %c0_53, %c0_54] : memref<2x8x32xf32, #tpu.memory_space<vmem>>, vector<2x8x32xf32>
    tpu.vector_store %arg13[%c0_52, %c0_53, %c0_54], %124 {strides = array<i32>} : memref<2x8x32xf32, #tpu.memory_space<vmem>>, vector<2x8x32xf32>,
    return
  }
  func.func @transform_0(%arg0: i32) -> (i32, i32, i32) {
    %c0_i32 = arith.constant 0 : i32
    %c0_i32_0 = arith.constant 0 : i32
    %c0_i32_1 = arith.constant 0 : i32
    return %arg0, %c0_i32, %c0_i32_0 : i32, i32, i32
  }
  func.func @transform_1(%arg0: i32) -> (i32, i32) {
    %c0_i32 = arith.constant 0 : i32
    %c0_i32_0 = arith.constant 0 : i32
    %c0_i32_1 = arith.constant 0 : i32
    return %c0_i32, %c0_i32_0 : i32, i32
  }
  func.func @transform_2(%arg0: i32) -> (i32, i32) {
    %c0_i32 = arith.constant 0 : i32
    %c0_i32_0 = arith.constant 0 : i32
    %c0_i32_1 = arith.constant 0 : i32
    return %c0_i32, %c0_i32_0 : i32, i32
  }
  func.func @transform_3(%arg0: i32) -> (i32, i32) {
    %c0_i32 = arith.constant 0 : i32
    %c0_i32_0 = arith.constant 0 : i32
    %c0_i32_1 = arith.constant 0 : i32
    return %c0_i32, %c0_i32_0 : i32, i32
  }
  func.func @transform_4(%arg0: i32) -> (i32, i32) {
    %c0_i32 = arith.constant 0 : i32
    %c0_i32_0 = arith.constant 0 : i32
    %c0_i32_1 = arith.constant 0 : i32
    return %c0_i32, %c0_i32_0 : i32, i32
  }
  func.func @transform_5(%arg0: i32) -> (i32, i32) {
    %c0_i32 = arith.constant 0 : i32
    %c0_i32_0 = arith.constant 0 : i32
    %c0_i32_1 = arith.constant 0 : i32
    return %c0_i32, %c0_i32_0 : i32, i32
  }
  func.func @transform_6(%arg0: i32) -> (i32, i32) {
    %c0_i32 = arith.constant 0 : i32
    %c0_i32_0 = arith.constant 0 : i32
    %c0_i32_1 = arith.constant 0 : i32
    return %c0_i32, %c0_i32_0 : i32, i32
  }
  func.func @transform_7(%arg0: i32) -> (i32, i32) {
    %c0_i32 = arith.constant 0 : i32
    %c0_i32_0 = arith.constant 0 : i32
    %c0_i32_1 = arith.constant 0 : i32
    return %c0_i32, %c0_i32_0 : i32, i32
  }
  func.func @transform_8(%arg0: i32) -> (i32, i32) {
    %c0_i32 = arith.constant 0 : i32
    %c0_i32_0 = arith.constant 0 : i32
    %c0_i32_1 = arith.constant 0 : i32
    return %c0_i32, %c0_i32_0 : i32, i32
  }
  func.func @transform_9(%arg0: i32) -> (i32, i32) {
    %c0_i32 = arith.constant 0 : i32
    %c0_i32_0 = arith.constant 0 : i32
    %c0_i32_1 = arith.constant 0 : i32
    return %c0_i32, %c0_i32_0 : i32, i32
  }
  func.func @transform_10(%arg0: i32) -> (i32, i32) {
    %c0_i32 = arith.constant 0 : i32
    %c0_i32_0 = arith.constant 0 : i32
    %c0_i32_1 = arith.constant 0 : i32
    return %c0_i32, %c0_i32_0 : i32, i32
  }
  func.func @transform_11(%arg0: i32) -> (i32, i32) {
    %c0_i32 = arith.constant 0 : i32
    %c0_i32_0 = arith.constant 0 : i32
    %c0_i32_1 = arith.constant 0 : i32
    return %c0_i32, %c0_i32_0 : i32, i32
  }
  func.func @transform_12(%arg0: i32) -> (i32, i32, i32) {
    %c0_i32 = arith.constant 0 : i32
    %c0_i32_0 = arith.constant 0 : i32
    %c0_i32_1 = arith.constant 0 : i32
    return %arg0, %c0_i32, %c0_i32_0 : i32, i32, i32
  }
}

</mosaic_0001>

<bundles_post_ra>
// kernel: tpu_custom_call.1
= control target key start
LH: loop header
LB: loop body
LE: loop exit
PB: predicated region body
PF: predicated region fallthrough
CT: control target
= control target key end

     0   :  { %s975_s0 = inlined_call_operand.vmem [shape: f32[2,8,32], index: 0, kind: input, shape index: {}]   ;;  %s976_s1 = inlined_call_operand.vmem [shape: f32[32,64], index: 1, kind: input, shape index: {}]   ;;  %s977_s2 = inlined_call_operand.vmem [shape: f32[32,32], index: 2, kind: input, shape index: {}]   ;;  %s978_s3 = inlined_call_operand.vmem [shape: f32[1,32], index: 3, kind: input, shape index: {}]   ;;  %s979_s4 = inlined_call_operand.vmem [shape: f32[1,32], index: 4, kind: input, shape index: {}]   ;;  %s980_s5 = inlined_call_operand.vmem [shape: f32[1,32], index: 5, kind: input, shape index: {}]   ;;  %s981_s6 = inlined_call_operand.vmem [shape: f32[32,128], index: 6, kind: input, shape index: {}]   ;;  %s982_s7 = inlined_call_operand.vmem [shape: f32[1,128], index: 7, kind: input, shape index: {}]   ;;  %s983_s8 = inlined_call_operand.vmem [shape: f32[128,32], index: 8, kind: input, shape index: {}]   ;;  %s984_s9 = inlined_call_operand.vmem [shape: f32[1,32], index: 9, kind: input, shape index: {}]   ;;  %s985_s10 = inlined_call_operand.vmem [shape: f32[1,32], index: 10, kind: input, shape index: {}]   ;;  %s986_s11 = inlined_call_operand.vmem [shape: f32[1,32], index: 11, kind: input, shape index: {}]   ;;  %s987_s12 = inlined_call_operand.hbm [shape: f32[2,8,32], index: 12, kind: output, shape index: {}]  }
   0x1   :  { %v47_v0 = vld [vmem:[%s976_s1 + $0x18] sm:$0xff]  ;;  %v46_v1 = vld [vmem:[%s976_s1 + $0x10] sm:$0xff]  ;;  %v45_v2 = vld [vmem:[%s976_s1 + $0x8] sm:$0xff] }
   0x2   :  { %67 = vmatpush.msra.mxu0 %v47_v0  ;;  %v44_v3 = vld [vmem:[%s976_s1] sm:$0xff] }
   0x4   :  { %68 = vmatpush.msra.mxu0 %v46_v1 }
   0x5   :  { %17 = vsyncpa [#allocation3], 0  ;;  %v804_v4 = vld [vmem:[%s975_s0] sm:$0xff]  ;;  %vm48_vm0 = vcmask 261120   ;;  %v811_v5 = vld [vmem:[%s975_s0 + $0x8] sm:$0xff]  ;;  %s716_s1 = smov 96   ;;  %v80_v14 = vlaneseq }
   0x6   :  { %69 = vmatpush.msra.mxu0 %v45_v2  ;;  %s717_s15 = smov 80   ;;  %s718_s16 = smov 112   ;;  %vm88_vm1 = vcmask 130048   ;;  %vm146_vm3 = vcmask 64512   ;;  %v352_v2 = vld [vmem:[%s977_s2 + $0x18] sm:$0xff] }
   0x7   :  { %v81_v15 = vshrl.u32 %v80_v14, 7  ;;  %v83_v16 = vand.u32 127, %v80_v14  ;;  %s719_s0 = smov 16   ;;  %s722_s27 = smov 128  }
   0x8   :  { %70 = vmatpush.msra.mxu0 %v44_v3  ;;  %v351_v3 = vld [vmem:[%s977_s2 + $0x10] sm:$0xff]  ;;  %s723_s28 = smov 8  }
   0x9   :  { %627 = vmatmul.msk.f32.vlgmr.msra.gmra.mxu0 %vm48_vm0, %v804_v4  ;;  %vm84_vm2 = vcmp.ge.s32.totalorder %v81_v15, %v83_v16 }
  0x11   :  { %628 = vmatmul.msk.f32.gmra.mxu0 %vm48_vm0, %v811_v5 }
  0x86   :  { %v72_v6 = vpop.f32.mrf.mxu0 }
  0x87   :  { %86 = vrot.lane.b32.xlu0 %v72_v6, %s716_s1  ;;  %v78_v10 = vmul.f32 0.0625, %v72_v6 }
  0x8e   :  { %v75_v7 = vpop.f32.mrf.mxu0 }
  0x8f   :  { %115 = vrot.lane.b32.xlu0 %v75_v7, %s716_s1  ;;  %v79_v8 = vmul.f32 0.0625, %v75_v7 }
  0x97   :  { %169 = vrot.lane.b32.xlu0 %v72_v6, %s717_s15  ;;  %v350_v6 = vld [vmem:[%s977_s2 + $0x8] sm:$0xff] }
  0x9f   :  { %245 = vrot.lane.b32.xlu0 %v79_v8, %s718_s16 }
  0xf9   :  { %v87_v9 = vpop.permute.xlu0 %86 }
  0xfa   :  { %629 = vmatpush.xpose.msk.msra.mxu1 %vm88_vm1, %v87_v9 }
  0xfd   :  { %630 = vmatmul.msk.f32.vlgmr.msra.gmra.mxu1 %vm88_vm1, %v78_v10 }
 0x101   :  { %v116_v11 = vpop.permute.xlu0 %115 }
 0x102   :  { %631 = vmatpush.xpose.msk.msra.mxu2 %vm88_vm1, %v116_v11 }
 0x105   :  { %632 = vmatmul.msk.f32.vlgmr.msra.gmra.mxu2 %vm88_vm1, %v79_v8 }
 0x106   :  { %637 = vmatpush.xpose.msk.msrb.mxu2 %vm88_vm1, %v116_v11 }
 0x109   :  { %v170_v12 = vpop.permute.xlu0 %169 }
 0x10a   :  { %190 = vmatpush.msrb.mxu1 %v170_v12  ;;  %311 = vmatpush.msra.mxu2 %v170_v12 }
 0x111   :  { %v246_v13 = vpop.permute.xlu0 %245 }
 0x112   :  { %638 = vmatmul.msk.f32.vlgmr.msrb.gmra.mxu2 %vm88_vm1, %v246_v13  ;;  %v653_v13 = vld [vmem:[%s978_s3] ss:$0 sm:$0xff]  ;;  %s615_s3 = sshll.u32 %s987_s12, 4  ;;  %s616_s3 = int_to_ptr.hbm [resolvable:$true] %s615_s3 }
 0x113   :  { %375 = vmatpush.msrb.mxu2 %v352_v2 }
 0x115   :  { %376 = vmatpush.msrb.mxu2 %v351_v3 }
 0x117   :  { %377 = vmatpush.msrb.mxu2 %v350_v6 }
 0x17a   :  { %v111_v17 = vpop.f32.mrf.mxu1 }
 0x17b   :  { %v144_v18 = vsel %vm84_vm2, %v111_v17, -1e+30 }
 0x17c   :  { %v147_v19 = vsel %vm146_vm3, %v144_v18, -inf }
 0x17d   :  { %148 = vmax.xlane.f32.xlu1 %v147_v19 }
 0x188   :  { %v139_v20 = vpop.f32.mrf.mxu2 }
 0x189   :  { %v145_v21 = vsel %vm84_vm2, %v139_v20, -1e+30  ;;  %v720_v20 = vmov 32.0  }
 0x18a   :  { %v150_v22 = vsel %vm146_vm3, %v145_v21, -inf }
 0x18b   :  { %151 = vmax.xlane.f32.xlu1 %v150_v22 }
 0x195   :  { %v266_v34 = vpop.f32.mrf.mxu2 }
 0x196   :  { %v270_v35 = vsel %vm84_vm2, %v266_v34, -1e+30 }
 0x197   :  { %v274_v36 = vsel %vm146_vm3, %v270_v35, -inf }
 0x1a4   :  { %195 = vrot.lane.b32.xlu1 %v75_v7, %s717_s15  ;;  %v349_v7 = vld [vmem:[%s977_s2] sm:$0xff] }
 0x1a5   :  { %378 = vmatpush.msrb.mxu2 %v349_v7 }
 0x1f0   :  { %v149_v23 = vpop.xlane.xlu1 %148 }
 0x1f1   :  { %v153_v24 = vsub.f32 %v144_v18, %v149_v23 }
 0x1f3   :  { %v155_v25 = vmul.f32 1.442695, %v153_v24 }
 0x1f5   :  { %660 = vpow2.f32 %v155_v25 }
 0x1fb   :  { %v661_v26 = vpop.eup %660 }
 0x1fc   :  { %v159_v27 = vsel %vm146_vm3, %v661_v26, 0.0 }
 0x1fd   :  { %160 = vadd.xlane.f32.xlu2 %v159_v27 }
 0x1fe   :  { %v152_v28 = vpop.xlane.xlu1 %151 }
 0x1ff   :  { %v154_v29 = vsub.f32 %v145_v21, %v152_v28 }
 0x201   :  { %v157_v30 = vmul.f32 1.442695, %v154_v29 }
 0x203   :  { %662 = vpow2.f32 %v157_v30 }
 0x209   :  { %v663_v31 = vpop.eup %662 }
 0x20a   :  { %v162_v32 = vsel %vm146_vm3, %v663_v31, 0.0 }
 0x20b   :  { %163 = vadd.xlane.f32.xlu2 %v162_v32 }
 0x216   :  { %v196_v33 = vpop.permute.xlu1 %195 }
 0x217   :  { %216 = vmatpush.msra.mxu1 %v196_v33 }
 0x223   :  { %221 = vrot.lane.b32.xlu2 %v78_v10, %s718_s16 }
 0x24c   :  { %275 = vmax.xlane.f32.xlu2 %v274_v36 }
 0x270   :  { %v161_v37 = vpop.xlane.xlu2 %160 }
 0x271   :  { %664 = vrcp.f32 %v161_v37  ;;  %v454_v37 = vld [vmem:[%s981_s6 + $0x18] sm:$0xff] }
 0x272   :  { %477 = vmatpush.msrb.mxu0 %v454_v37 }
 0x277   :  { %v665_v38 = vpop.eup %664 }
 0x278   :  { %v167_v39 = vmul.f32 %v665_v38, %v661_v26  ;;  %v453_v38 = vld [vmem:[%s981_s6 + $0x10] sm:$0xff] }
 0x279   :  { %478 = vmatpush.msrb.mxu0 %v453_v38 }
 0x27a   :  { %633 = vmatmul.msk.f32.vlgmr.msrb.gmra.mxu1 %vm146_vm3, %v167_v39  ;;  %v452_v39 = vld [vmem:[%s981_s6 + $0x8] sm:$0xff] }
 0x27b   :  { %635 = vmatpush.xpose.msk.msrb.mxu1 %vm88_vm1, %v87_v9  ;;  %479 = vmatpush.msrb.mxu0 %v452_v39 }
 0x27e   :  { %v164_v40 = vpop.xlane.xlu2 %163 }
 0x27f   :  { %666 = vrcp.f32 %v164_v40  ;;  %v451_v40 = vld [vmem:[%s981_s6] sm:$0xff] }
 0x280   :  { %480 = vmatpush.msrb.mxu0 %v451_v40 }
 0x285   :  { %v667_v41 = vpop.eup %666 }
 0x286   :  { %v168_v42 = vmul.f32 %v667_v41, %v663_v31  ;;  %v222_v43 = vpop.permute.xlu2 %221 }
 0x288   :  { %634 = vmatmul.msk.f32.vlgmr.msra.gmra.mxu1 %vm146_vm3, %v168_v42 }
 0x289   :  { %334 = vmatpush.msra.mxu1 %v196_v33 }
 0x290   :  { %636 = vmatmul.msk.f32.vlgmr.msrb.gmra.mxu1 %vm88_vm1, %v222_v43 }
 0x2bf   :  { %v276_v45 = vpop.xlane.xlu2 %275 }
 0x2c0   :  { %v278_v47 = vsub.f32 %v270_v35, %v276_v45  ;;  %v520_v45 = vld [vmem:[%s983_s8 + $0x70] sm:$0xff] }
 0x2c2   :  { %v281_v48 = vmul.f32 1.442695, %v278_v47 }
 0x2c4   :  { %668 = vpow2.f32 %v281_v48  ;;  %v519_v48 = vld [vmem:[%s983_s8 + $0x68] sm:$0xff] }
 0x2ca   :  { %v669_v52 = vpop.eup %668 }
 0x2cb   :  { %v286_v53 = vsel %vm146_vm3, %v669_v52, 0.0 }
 0x2f7   :  { %v192_v44 = vpop.f32.mrf.mxu1 }
 0x305   :  { %v218_v46 = vpop.f32.mrf.mxu1 }
 0x30d   :  { %v242_v49 = vpop.f32.mrf.mxu1 }
 0x30e   :  { %v269_v50 = vsel %vm84_vm2, %v242_v49, -1e+30 }
 0x30f   :  { %v271_v51 = vsel %vm146_vm3, %v269_v50, -inf }
 0x310   :  { %272 = vmax.xlane.f32.xlu0 %v271_v51  ;;  %v518_v51 = vld [vmem:[%s983_s8 + $0x60] sm:$0xff] }
 0x318   :  { %287 = vadd.xlane.f32.xlu0 %v286_v53 }
 0x383   :  { %v273_v54 = vpop.xlane.xlu0 %272 }
 0x384   :  { %v277_v55 = vsub.f32 %v269_v50, %v273_v54 }
 0x386   :  { %v279_v56 = vmul.f32 1.442695, %v277_v55 }
 0x388   :  { %670 = vpow2.f32 %v279_v56 }
 0x38b   :  { %v288_v57 = vpop.xlane.xlu0 %287 }
 0x38c   :  { %672 = vrcp.f32 %v288_v57 }
 0x38e   :  { %v671_v58 = vpop.eup %670 }
 0x38f   :  { %v283_v59 = vsel %vm146_vm3, %v671_v58, 0.0 }
 0x390   :  { %284 = vadd.xlane.f32.xlu1 %v283_v59  ;;  %v654_v59 = vld [vmem:[%s979_s4] ss:$0 sm:$0xff] }
 0x392   :  { %v673_v60 = vpop.eup %672 }
 0x393   :  { %v292_v61 = vmul.f32 %v673_v60, %v669_v52 }
 0x395   :  { %640 = vmatmul.msk.f32.vlgmr.msra.gmra.mxu1 %vm146_vm3, %v292_v61 }
 0x403   :  { %v285_v62 = vpop.xlane.xlu1 %284 }
 0x404   :  { %674 = vrcp.f32 %v285_v62 }
 0x405   :  { %676 = vrcp.f32 %v720_v20  ;;  %v508_v20 = vld [vmem:[%s983_s8 + $0x10] sm:$0xff] }
 0x40a   :  { %v675_v63 = vpop.eup %674 }
 0x40b   :  { %v291_v0 = vmul.f32 %v675_v63, %v671_v58  ;;  %v677_v21 = vpop.eup %676  ;;  %v655_v63 = vld [vmem:[%s980_s5] ss:$0 sm:$0xff] }
 0x40c   :  { %v395_v22 = vmul.f32 32.0, %v677_v21  ;;  %vm399_vm4 = vweird.f32 %v677_v21 }
 0x40d   :  { %639 = vmatmul.msk.f32.vlgmr.msra.gmra.mxu2 %vm146_vm3, %v291_v0 }
 0x40e   :  { %v396_v23 = vsub.f32 1.0, %v395_v22  ;;  %v506_v22 = vld [vmem:[%s983_s8] sm:$0xff] }
 0x410   :  { %v397_v24 = vmul.f32 %v677_v21, %v396_v23  ;;  %v656_v23 = vld [vmem:[%s982_s7] ss:$0 sm:$0xff] }
 0x412   :  { %v336_v1 = vpop.f32.mrf.mxu1  ;;  %v398_v25 = vadd.f32 %v677_v21, %v397_v24 }
 0x413   :  { %343 = vrot.lane.b32.xlu0 %v336_v1, %s719_s0 }
 0x414   :  { %v864_v26 = vsel %vm399_vm4, %v677_v21, %v398_v25  ;;  %v507_v21 = vld [vmem:[%s983_s8 + $0x8] sm:$0xff] }
 0x485   :  { %v344_v11 = vpop.permute.xlu0 %343 }
 0x486   :  { %v348_v12 = vsel %vm88_vm1, %v218_v46, %v344_v11 }
 0x490   :  { %v313_v8 = vpop.f32.mrf.mxu2 }
 0x491   :  { %341 = vrot.lane.b32.xlu2 %v313_v8, %s719_s0 }
 0x4eb   :  { %v342_v9 = vpop.permute.xlu2 %341 }
 0x4ec   :  { %v347_v10 = vsel %vm88_vm1, %v192_v44, %v342_v9  ;;  %v521_v44 = vld [vmem:[%s983_s8 + $0x78] sm:$0xff] }
 0x4ed   :  { %641 = vmatmul.msk.f32.vlgmr.msrb.gmra.mxu2 %vm48_vm0, %v347_v10  ;;  %526 = vmatpush.msra.mxu3 %v521_v44 }
 0x4ef   :  { %527 = vmatpush.msra.mxu3 %v520_v45 }
 0x4f1   :  { %528 = vmatpush.msra.mxu3 %v519_v48 }
 0x4f3   :  { %529 = vmatpush.msra.mxu3 %v518_v51 }
 0x4f5   :  { %642 = vmatmul.msk.f32.gmra.mxu2 %vm48_vm0, %v348_v12 }
 0x570   :  { %v380_v14 = vpop.f32.mrf.mxu2 }
 0x571   :  { %v381_v15 = vadd.f32 %v653_v13, %v380_v14  ;;  %v515_v14 = vld [vmem:[%s983_s8 + $0x48] sm:$0xff] }
 0x573   :  { %v388_v16 = vsel %vm48_vm0, %v381_v15, 0.0 }
 0x574   :  { %389 = vadd.xlane.f32.xlu1 %v388_v16  ;;  %v512_v16 = vld [vmem:[%s983_s8 + $0x30] sm:$0xff] }
 0x578   :  { %v383_v17 = vpop.f32.mrf.mxu2 }
 0x579   :  { %v384_v18 = vadd.f32 %v653_v13, %v383_v17  ;;  %v517_v13 = vld [vmem:[%s983_s8 + $0x58] sm:$0xff]  ;;  %v511_v17 = vld [vmem:[%s983_s8 + $0x28] sm:$0xff] }
 0x57a   :  { %530 = vmatpush.msra.mxu3 %v517_v13 }
 0x57b   :  { %v391_v19 = vsel %vm48_vm0, %v384_v18, 0.0 }
 0x57c   :  { %392 = vadd.xlane.f32.xlu1 %v391_v19  ;;  %v509_v19 = vld [vmem:[%s983_s8 + $0x18] sm:$0xff] }
 0x5e7   :  { %v390_v27 = vpop.xlane.xlu1 %389 }
 0x5e8   :  { %v401_v28 = vmul.f32 %v864_v26, %v390_v27 }
 0x5ea   :  { %v403_v29 = vsub.f32 %v381_v15, %v401_v28  ;;  %v513_v15 = vld [vmem:[%s983_s8 + $0x38] sm:$0xff] }
 0x5ec   :  { %v405_v30 = vmul.f32 %v403_v29, %v403_v29 }
 0x5ee   :  { %v407_v31 = vsel %vm48_vm0, %v405_v30, 0.0 }
 0x5ef   :  { %408 = vadd.xlane.f32.xlu1 %v407_v31  ;;  %v393_v32 = vpop.xlane.xlu1 %392 }
 0x5f0   :  { %v402_v33 = vmul.f32 %v864_v26, %v393_v32 }
 0x5f2   :  { %v404_v34 = vsub.f32 %v384_v18, %v402_v33  ;;  %v510_v18 = vld [vmem:[%s983_s8 + $0x20] sm:$0xff] }
 0x5f4   :  { %v406_v35 = vmul.f32 %v404_v34, %v404_v34 }
 0x5f6   :  { %v410_v36 = vsel %vm48_vm0, %v406_v35, 0.0 }
 0x5f7   :  { %411 = vadd.xlane.f32.xlu0 %v410_v36 }
 0x662   :  { %v409_v41 = vpop.xlane.xlu1 %408 }
 0x663   :  { %v413_v42 = vmul.f32 %v409_v41, %v864_v26 }
 0x665   :  { %v415_v43 = vadd.f32 1e-05, %v413_v42 }
 0x667   :  { %678 = vrsqrt.f32 %v415_v43  ;;  %vm423_vm6 = vweird.f32 %v415_v43 }
 0x66a   :  { %v412_v46 = vpop.xlane.xlu0 %411 }
 0x66b   :  { %v414_v47 = vmul.f32 %v412_v46, %v864_v26 }
 0x66d   :  { %v679_v49 = vpop.eup %678  ;;  %v416_v50 = vadd.f32 1e-05, %v414_v47  ;;  %v657_v47 = vld [vmem:[%s984_s9] ss:$0 sm:$0xff] }
 0x66e   :  { %v418_v52 = vmul.f32 %v679_v49, %v415_v43  ;;  %vm424_vm5 = vweird.f32 %v679_v49 }
 0x66f   :  { %680 = vrsqrt.f32 %v416_v50  ;;  %vm425_vm7 = vmor %vm423_vm6, %vm424_vm5  ;;  %vm433_vm9 = vweird.f32 %v416_v50 }
 0x670   :  { %v419_v53 = vmul.f32 %v679_v49, %v418_v52 }
 0x672   :  { %v420_v54 = vmul.f32 0.5, %v419_v53 }
 0x674   :  { %v421_v55 = vsub.f32 1.5, %v420_v54 }
 0x675   :  { %v681_v56 = vpop.eup %680 }
 0x676   :  { %v422_v57 = vmul.f32 %v679_v49, %v421_v55  ;;  %v428_v58 = vmul.f32 %v681_v56, %v416_v50  ;;  %vm434_vm8 = vweird.f32 %v681_v56 }
 0x677   :  { %vm435_vm10 = vmor %vm433_vm9, %vm434_vm8 }
 0x678   :  { %v426_v60 = vsel %vm425_vm7, %v679_v49, %v422_v57  ;;  %v429_v61 = vmul.f32 %v681_v56, %v428_v58 }
 0x679   :  { %v437_v62 = vmul.f32 %v426_v60, %v403_v29 }
 0x67a   :  { %v430_v0 = vmul.f32 0.5, %v429_v61 }
 0x67b   :  { %v442_v1 = vmul.f32 %v654_v59, %v437_v62 }
 0x67c   :  { %v431_v2 = vsub.f32 1.5, %v430_v0 }
 0x67d   :  { %v447_v3 = vadd.f32 %v655_v63, %v442_v1 }
 0x67e   :  { %v432_v6 = vmul.f32 %v681_v56, %v431_v2 }
 0x67f   :  { %v903_v7 = vadd.f32 %v447_v3, %v804_v4  ;;  %v516_v4 = vld [vmem:[%s983_s8 + $0x50] sm:$0xff] }
 0x680   :  { %v436_v8 = vsel %vm435_vm10, %v681_v56, %v432_v6  ;;  %531 = vmatpush.msra.mxu3 %v516_v4 }
 0x681   :  { %v438_v9 = vmul.f32 %v436_v8, %v404_v34  ;;  %643 = vmatmul.msk.f32.vlgmr.msrb.gmra.mxu0 %vm48_vm0, %v903_v7 }
 0x682   :  { %532 = vmatpush.msra.mxu3 %v515_v14 }
 0x683   :  { %v443_v10 = vmul.f32 %v654_v59, %v438_v9 }
 0x685   :  { %v448_v11 = vadd.f32 %v655_v63, %v443_v10 }
 0x687   :  { %v908_v12 = vadd.f32 %v448_v11, %v811_v5  ;;  %v514_v5 = vld [vmem:[%s983_s8 + $0x40] sm:$0xff] }
 0x688   :  { %533 = vmatpush.msra.mxu3 %v514_v5 }
 0x689   :  { %644 = vmatmul.msk.f32.gmra.mxu0 %vm48_vm0, %v908_v12 }
 0x68a   :  { %534 = vmatpush.msra.mxu3 %v513_v15 }
 0x68c   :  { %535 = vmatpush.msra.mxu3 %v512_v16  ;;  %v658_v16 = vld [vmem:[%s985_s10] ss:$0 sm:$0xff]  ;;  %s721_s10 = smov [#allocation2]  }
 0x68d   :  { %s613_s26 = sshll.u32 %s721_s10, 4  ;;  %s614_s26 = int_to_ptr.vmem [resolvable:$true] %s613_s26 }
 0x68e   :  { %536 = vmatpush.msra.mxu3 %v511_v17 }
 0x690   :  { %537 = vmatpush.msra.mxu3 %v510_v18 }
 0x692   :  { %538 = vmatpush.msra.mxu3 %v509_v19 }
 0x694   :  { %539 = vmatpush.msra.mxu3 %v508_v20 }
 0x696   :  { %540 = vmatpush.msra.mxu3 %v507_v21 }
 0x698   :  { %541 = vmatpush.msra.mxu3 %v506_v22 }
 0x6fe   :  { %v482_v24 = vpop.f32.mrf.mxu0 }
 0x6ff   :  { %v483_v25 = vadd.f32 %v656_v23, %v482_v24 }
 0x701   :  { %v490_v27 = vmul.f32 %v483_v25, %v483_v25  ;;  %v488_v40 = vmul.f32 0.5, %v483_v25 }
 0x703   :  { %v492_v28 = vmul.f32 %v490_v27, %v483_v25 }
 0x705   :  { %v494_v29 = vmul.f32 0.044715, %v492_v28 }
 0x706   :  { %v485_v30 = vpop.f32.mrf.mxu0 }
 0x707   :  { %v486_v31 = vadd.f32 %v656_v23, %v485_v30  ;;  %v496_v32 = vadd.f32 %v494_v29, %v483_v25 }
 0x709   :  { %v491_v33 = vmul.f32 %v486_v31, %v486_v31  ;;  %v498_v34 = vmul.f32 0.7978846, %v496_v32  ;;  %v489_v44 = vmul.f32 0.5, %v486_v31 }
 0x70b   :  { %v493_v35 = vmul.f32 %v491_v33, %v486_v31  ;;  %682 = vtanh.f32 %v498_v34 }
 0x70d   :  { %v495_v36 = vmul.f32 0.044715, %v493_v35 }
 0x70f   :  { %v497_v37 = vadd.f32 %v495_v36, %v486_v31 }
 0x711   :  { %v683_v38 = vpop.eup %682  ;;  %v499_v39 = vmul.f32 0.7978846, %v497_v37 }
 0x712   :  { %v502_v41 = vadd.f32 1.0, %v683_v38 }
 0x713   :  { %684 = vtanh.f32 %v499_v39 }
 0x714   :  { %v504_v42 = vmul.f32 %v502_v41, %v488_v40 }
 0x716   :  { %542 = vmatmul.f32.vlgmr.msra.gmra.mxu3 %v504_v42 }
 0x719   :  { %v685_v43 = vpop.eup %684 }
 0x71a   :  { %v503_v45 = vadd.f32 1.0, %v685_v43 }
 0x71c   :  { %v505_v46 = vmul.f32 %v503_v45, %v489_v44 }
 0x71e   :  { %545 = vmatmul.f32.gmra.mxu3 %v505_v46 }
 0x799   :  { %v543_v48 = vpop.f32.mrf.mxu3 }
 0x79a   :  { %v544_v49 = vadd.f32 %v657_v47, %v543_v48 }
 0x79c   :  { %v551_v50 = vsel %vm48_vm0, %v544_v49, 0.0 }
 0x79d   :  { %552 = vadd.xlane.f32.xlu2 %v551_v50 }
 0x7a1   :  { %v546_v51 = vpop.f32.mrf.mxu3 }
 0x7a2   :  { %v547_v52 = vadd.f32 %v657_v47, %v546_v51 }
 0x7a4   :  { %v554_v53 = vsel %vm48_vm0, %v547_v52, 0.0 }
 0x7a5   :  { %555 = vadd.xlane.f32.xlu1 %v554_v53 }
 0x810   :  { %v553_v54 = vpop.xlane.xlu2 %552 }
 0x811   :  { %v557_v55 = vmul.f32 %v553_v54, %v864_v26 }
 0x813   :  { %v559_v56 = vsub.f32 %v544_v49, %v557_v55 }
 0x815   :  { %v561_v57 = vmul.f32 %v559_v56, %v559_v56 }
 0x817   :  { %v563_v58 = vsel %vm48_vm0, %v561_v57, 0.0 }
 0x818   :  { %v556_v59 = vpop.xlane.xlu1 %555  ;;  %564 = vadd.xlane.f32.xlu1 %v563_v58 }
 0x819   :  { %v558_v60 = vmul.f32 %v556_v59, %v864_v26 }
 0x81b   :  { %v560_v61 = vsub.f32 %v547_v52, %v558_v60 }
 0x81d   :  { %v562_v62 = vmul.f32 %v560_v61, %v560_v61 }
 0x81f   :  { %v566_v63 = vsel %vm48_vm0, %v562_v62, 0.0 }
 0x820   :  { %567 = vadd.xlane.f32.xlu1 %v566_v63 }
 0x88b   :  { %v565_v0 = vpop.xlane.xlu1 %564 }
 0x88c   :  { %v569_v1 = vmul.f32 %v565_v0, %v864_v26 }
 0x88e   :  { %v571_v2 = vadd.f32 1e-05, %v569_v1 }
 0x890   :  { %686 = vrsqrt.f32 %v571_v2  ;;  %vm579_vm12 = vweird.f32 %v571_v2 }
 0x893   :  { %v568_v3 = vpop.xlane.xlu1 %567 }
 0x894   :  { %v570_v6 = vmul.f32 %v568_v3, %v864_v26  ;;  %v659_v26 = vld [vmem:[%s986_s11] ss:$0 sm:$0xff] }
 0x896   :  { %v687_v8 = vpop.eup %686  ;;  %v572_v9 = vadd.f32 1e-05, %v570_v6 }
 0x897   :  { %v574_v10 = vmul.f32 %v687_v8, %v571_v2  ;;  %vm580_vm11 = vweird.f32 %v687_v8 }
 0x898   :  { %688 = vrsqrt.f32 %v572_v9  ;;  %vm581_vm13 = vmor %vm579_vm12, %vm580_vm11  ;;  %vm589_vm15 = vweird.f32 %v572_v9 }
 0x899   :  { %v575_v11 = vmul.f32 %v687_v8, %v574_v10 }
 0x89b   :  { %v576_v13 = vmul.f32 0.5, %v575_v11 }
 0x89d   :  { %v577_v4 = vsub.f32 1.5, %v576_v13 }
 0x89e   :  { %v689_v14 = vpop.eup %688 }
 0x89f   :  { %v578_v5 = vmul.f32 %v687_v8, %v577_v4  ;;  %v584_v15 = vmul.f32 %v689_v14, %v572_v9  ;;  %vm590_vm14 = vweird.f32 %v689_v14 }
 0x8a0   :  { %vm591_vm1 = vmor %vm589_vm15, %vm590_vm14 }
 0x8a1   :  { %v582_v17 = vsel %vm581_vm13, %v687_v8, %v578_v5  ;;  %v585_v18 = vmul.f32 %v689_v14, %v584_v15 }
 0x8a2   :  { %v593_v19 = vmul.f32 %v582_v17, %v559_v56 }
 0x8a3   :  { %v586_v20 = vmul.f32 0.5, %v585_v18 }
 0x8a4   :  { %v598_v21 = vmul.f32 %v658_v16, %v593_v19 }
 0x8a5   :  { %v587_v22 = vsub.f32 1.5, %v586_v20 }
 0x8a6   :  { %v603_v23 = vadd.f32 %v659_v26, %v598_v21 }
 0x8a7   :  { %v588_v24 = vmul.f32 %v689_v14, %v587_v22 }
 0x8a8   :  { %v605_v25 = vadd.f32 %v603_v23, %v903_v7 }
 0x8a9   :  { %v592_v27 = vsel %vm591_vm1, %v689_v14, %v588_v24 }
 0x8aa   :  { %v594_v28 = vmul.f32 %v592_v27, %v560_v61  ;;  %607 = vst.msk [vmem:[#allocation2] sm:$0xff] %vm48_vm0, %v605_v25 }
 0x8ac   :  { %v599_v29 = vmul.f32 %v658_v16, %v594_v28 }
 0x8ae   :  { %v604_v30 = vadd.f32 %v659_v26, %v599_v29 }
 0x8b0   :  { %v606_v31 = vadd.f32 %v604_v30, %v908_v12 }
 0x8b2   :  { %608 = vst.msk [vmem:[#allocation2 + $0x8] sm:$0xff] %vm48_vm0, %v606_v31 }
 0x8b3   :  { %621 = dma.vmem_to_hbm [thread:$0]  %s614_s26, 256, %s616_s3, [#allocation3], %s722_s27, %s722_s27, %s723_s28  }
 0x8b4   :  { %714 = dma.done.wait [#allocation3], 256  }
 0x8b5   :  { %715 = vsyncadd [#allocation3], 4294967040 }
 0x8b6   :  { %626 = vsyncpa [#allocation3], 1 }

</bundles_post_ra>
